<compile_context>
chip_gen: v5e
topology: v5e:2x2
jax: 0.10.0
libtpu: 0.0.40
codegen_flags: <defaults>
</compile_context>

<pallas_src>
import functools

import jax
import jax.numpy as jnp
from jax.experimental import pallas as pl
from jax.experimental.pallas import tpu as pltpu


# ----------------------------------------------------------------------------
# Kernel
# ----------------------------------------------------------------------------
def _inv_apprx(x, t, m):
    # Homomorphic-encryption-friendly approximation of 1/x, elementwise.
    # Share the (2/m)*x product between the two seed terms (pure VALU work).
    s = (2.0 / m) * x
    a = 2.0 - s
    b = 1.0 - s
    for _ in range(t):
        b = b * b
        a = a * (1.0 + b)
    return (2.0 / m) * a


def _combnet_kernel(x_ref, w_ref, b_ref, out_ref, *, tau, t1, t2, C):
    x = x_ref[...]                                                    # (TB, D)
    # Single fused matmul: (TB, D) @ (D, 2C) + (1, 2C) -> (TB, 2C)
    y = jnp.dot(x, w_ref[...], preferred_element_type=jnp.float32) + b_ref[...]
    x1 = y[:, :C]                                                     # net_orig logits
    x2 = y[:, C:]                                                     # net_fake logits

    # comp_max_tau: conceptually res = concat([x1, tau*ones(TB,1)], axis=1).
    # The appended tau column is tracked separately; iteration 0 folds its
    # square (tau**2) into a compile-time scalar.  Math is identical.
    res_main = x1                                                     # (TB, C)
    res_tau = None                                                    # (TB, 1) after iter 0
    tau_sq = tau * tau

    for i in range(t1):
        res_main = res_main * res_main
        if res_tau is None:
            sum_res = jnp.sum(res_main, axis=1, keepdims=True) + tau_sq
        else:
            res_tau = res_tau * res_tau
            sum_res = jnp.sum(res_main, axis=1, keepdims=True) + res_tau
        m = (2.0 + tau_sq) if i == 0 else 2.0
        inv = _inv_apprx(sum_res, t2, m)                              # (TB, 1)
        if i + 1 < t1:                      # last res_main update is unused
            res_main = res_main * inv
        res_tau = (tau_sq * inv) if res_tau is None else (res_tau * inv)

    if res_tau is None:                     # t1 == 0 edge case: res[:, -1] == tau
        cond = jnp.full((x1.shape[0], 1), tau, dtype=jnp.float32)
    else:
        cond = res_tau                                                # res[:, -1]

    # out = x1*(1-cond) + x2*cond  ==  x1 + cond*(x2 - x1)  (one fewer vmul)
    out_ref[...] = x1 + cond * (x2 - x1)


# ----------------------------------------------------------------------------
# Wrapper
# ----------------------------------------------------------------------------
def combnet_he_forward(x, w1, b1, w2, b2, *, tau=0.5, t1=3, t2=3, tb_max=512):
    B, D = x.shape
    C = w1.shape[1]

    # Fuse the two classifiers into one matmul operand set.
    w = jnp.concatenate([w1, w2], axis=1).astype(jnp.float32)         # (D, 2C)
    b = jnp.concatenate([b1, b2]).reshape(1, 2 * C).astype(jnp.float32)

    # Batch tile: whole batch when small (full-dim block is always legal),
    # otherwise a multiple-of-8 tile so BlockSpec pipelining kicks in, capped
    # so the double-buffered x tile stays well under the scoped VMEM limit on
    # all of v5e / v6e / v7x (including v7x's 64 MiB physical VMEM).
    if B <= tb_max:
        tb = B
    else:
        bytes_per_row = 4 * (D + 3 * C)                   # x row + y + out
        rows_budget = max(8, (8 << 20) // max(bytes_per_row, 1))
        tb = max(8, (min(tb_max, rows_budget) // 8) * 8)
    grid = (pl.cdiv(B, tb),)

    kernel = functools.partial(
        _combnet_kernel, tau=float(tau), t1=int(t1), t2=int(t2), C=int(C)
    )

    flops = 2 * B * D * (2 * C)
    bytes_accessed = 4 * (B * D + D * 2 * C + 2 * C + B * C)

    # TODO(synk): for very narrow C the final store is a masked vst; a
    # lane-dense (B*C/128, 128) output layout would remove that but requires
    # an in-kernel cross-lane repack and B*C % 128 == 0, so it is not done here.
    return pl.pallas_call(
        kernel,
        out_shape=jax.ShapeDtypeStruct((B, C), jnp.float32),
        grid=grid,
        in_specs=[
            pl.BlockSpec((tb, D), lambda i: (i, 0)),          # x: batch-tiled
            pl.BlockSpec((D, 2 * C), lambda i: (0, 0)),       # fused W: resident
            pl.BlockSpec((1, 2 * C), lambda i: (0, 0)),       # fused b: resident
        ],
        out_specs=pl.BlockSpec((tb, C), lambda i: (i, 0)),
        compiler_params=pltpu.CompilerParams(
            dimension_semantics=("parallel",),
        ),
        cost_estimate=pl.CostEstimate(
            flops=flops, transcendentals=0, bytes_accessed=bytes_accessed
        ),
    )(x.astype(jnp.float32), w, b)


# ----------------------------------------------------------------------------
# Pure-JAX reference (mirrors the PyTorch code literally, incl. concatenation)
# ----------------------------------------------------------------------------
def _ref_inv_apprx(x, t, m):
    a = 2.0 - 2.0 / m * x
    b = 1.0 - 2.0 / m * x
    for _ in range(t):
        b = b * b
        a = a * (1.0 + b)
    return 2.0 / m * a


def _ref_forward(x, w1, b1, w2, b2, tau=0.5, t1=3, t2=3):
    x1 = x @ w1 + b1
    x2 = x @ w2 + b2
    res = jnp.concatenate(
        [x1, tau * jnp.ones((x1.shape[0], 1), jnp.float32)], axis=1
    )
    for i in range(t1):
        res = res * res
        sum_res = res.sum(1)
        m = (2.0 + tau * tau) if i == 0 else 2.0
        inv = _ref_inv_apprx(sum_res, t2, m)
        res = res * inv.reshape(-1, 1)
    cond = res[:, -1]
    return x1 * (1.0 - cond[:, None]) + x2 * cond[:, None]


# ----------------------------------------------------------------------------
if __name__ == "__main__":
    B, D, C = 4, 32, 8          # batch, in-features, num classes
    tau, t1, t2 = 0.5, 3, 3

    key = jax.random.PRNGKey(0)
    kx, k1, k2, k3, k4 = jax.random.split(key, 5)
    x = jax.random.normal(kx, (B, D), jnp.float32) * 0.1
    # net_orig: Linear(D, C);   net_fake: Linear(D, C)  (deterministic init)
    w1 = jax.random.normal(k1, (D, C), jnp.float32) * 0.1
    b1 = jax.random.normal(k2, (C,), jnp.float32) * 0.01
    w2 = jax.random.normal(k3, (D, C), jnp.float32) * 0.1
    b2 = jax.random.normal(k4, (C,), jnp.float32) * 0.01

    out = combnet_he_forward(x, w1, b1, w2, b2, tau=tau, t1=t1, t2=t2)
    out = jax.block_until_ready(out)

    ref = _ref_forward(x, w1, b1, w2, b2, tau=tau, t1=t1, t2=t2)
    assert out.shape == (B, C)
    assert jnp.allclose(out, ref, atol=1e-5, rtol=1e-5), "mismatch vs reference"

    print("KERNEL_OK")
</pallas_src>

<mosaic_0001>
module attributes {stable_mosaic.version = 11 : i64} {
  func.func @_combnet_kernel(%arg0: i32, %arg1: memref<4x32xf32, #tpu.memory_space<vmem>>, %arg2: memref<32x16xf32, #tpu.memory_space<vmem>>, %arg3: memref<1x16xf32, #tpu.memory_space<vmem>>, %arg4: memref<4x8xf32, #tpu.memory_space<vmem>>) attributes {dimension_semantics = [#tpu.dimension_semantics<parallel>], iteration_bounds = array<i64: 1>, scalar_prefetch = 0 : i64, scratch_operands = 0 : i64, tpu.core_type = #tpu.core_type<tc>, window_params = [{transform_indices = @transform_0, window_bounds = array<i64: 4, 32>}, {pipeline_mode = #tpu.pipeline_mode<synchronous>, transform_indices = @transform_1, window_bounds = array<i64: 32, 16>}, {pipeline_mode = #tpu.pipeline_mode<synchronous>, transform_indices = @transform_2, window_bounds = array<i64: 1, 16>}, {transform_indices = @transform_3, window_bounds = array<i64: 4, 8>}]} {
    %c0 = arith.constant 0 : index
    %c0_0 = arith.constant 0 : index
    %0 = vector.load %arg1[%c0, %c0_0] : memref<4x32xf32, #tpu.memory_space<vmem>>, vector<4x32xf32>
    %c0_1 = arith.constant 0 : index
    %c0_2 = arith.constant 0 : index
    %1 = vector.load %arg2[%c0_1, %c0_2] : memref<32x16xf32, #tpu.memory_space<vmem>>, vector<32x16xf32>
    %cst = arith.constant dense<0.000000e+00> : vector<4x16xf32>
    %2 = tpu.matmul %0, %1, %cst {dimension_numbers = #tpu.dot_dimension_numbers<[1], [0], [0], [1], [0, 0, 1, 1], [], []>} : vector<4x32xf32>, vector<32x16xf32>, vector<4x16xf32> -> vector<4x16xf32>
    %c0_3 = arith.constant 0 : index
    %c0_4 = arith.constant 0 : index
    %3 = vector.load %arg3[%c0_3, %c0_4] : memref<1x16xf32, #tpu.memory_space<vmem>>, vector<1x16xf32>
    %4 = vector.broadcast %3 : vector<1x16xf32> to vector<4x16xf32>
    %5 = arith.addf %2, %4 : vector<4x16xf32>
    %6 = vector.extract_strided_slice %5 {offsets = [0, 0], sizes = [4, 8], strides = [1, 1]} : vector<4x16xf32> to vector<4x8xf32>
    %7 = vector.extract_strided_slice %5 {offsets = [0, 8], sizes = [4, 8], strides = [1, 1]} : vector<4x16xf32> to vector<4x8xf32>
    %8 = arith.mulf %6, %6 : vector<4x8xf32>
    %cst_5 = arith.constant dense<0.000000e+00> : vector<4xf32>
    %9 = vector.multi_reduction <add>, %8, %cst_5 [1] : vector<4x8xf32> to vector<4xf32>
    %10 = vector.shape_cast %9 : vector<4xf32> to vector<4x1xf32>
    %cst_6 = arith.constant 2.500000e-01 : f32
    %11 = vector.broadcast %cst_6 : f32 to vector<4x1xf32>
    %12 = arith.addf %10, %11 : vector<4x1xf32>
    %cst_7 = arith.constant 0.888888895 : f32
    %13 = vector.broadcast %cst_7 : f32 to vector<4x1xf32>
    %14 = arith.mulf %13, %12 : vector<4x1xf32>
    %cst_8 = arith.constant 2.000000e+00 : f32
    %15 = vector.broadcast %cst_8 : f32 to vector<4x1xf32>
    %16 = arith.subf %15, %14 : vector<4x1xf32>
    %cst_9 = arith.constant 1.000000e+00 : f32
    %17 = vector.broadcast %cst_9 : f32 to vector<4x1xf32>
    %18 = arith.subf %17, %14 : vector<4x1xf32>
    %19 = arith.mulf %18, %18 : vector<4x1xf32>
    %cst_10 = arith.constant 1.000000e+00 : f32
    %20 = vector.broadcast %cst_10 : f32 to vector<4x1xf32>
    %21 = arith.addf %20, %19 : vector<4x1xf32>
    %22 = arith.mulf %16, %21 : vector<4x1xf32>
    %23 = arith.mulf %19, %19 : vector<4x1xf32>
    %cst_11 = arith.constant 1.000000e+00 : f32
    %24 = vector.broadcast %cst_11 : f32 to vector<4x1xf32>
    %25 = arith.addf %24, %23 : vector<4x1xf32>
    %26 = arith.mulf %22, %25 : vector<4x1xf32>
    %27 = arith.mulf %23, %23 : vector<4x1xf32>
    %cst_12 = arith.constant 1.000000e+00 : f32
    %28 = vector.broadcast %cst_12 : f32 to vector<4x1xf32>
    %29 = arith.addf %28, %27 : vector<4x1xf32>
    %30 = arith.mulf %26, %29 : vector<4x1xf32>
    %cst_13 = arith.constant 0.888888895 : f32
    %31 = vector.broadcast %cst_13 : f32 to vector<4x1xf32>
    %32 = arith.mulf %31, %30 : vector<4x1xf32>
    %33 = vector.broadcast %32 : vector<4x1xf32> to vector<4x8xf32>
    %34 = arith.mulf %8, %33 : vector<4x8xf32>
    %cst_14 = arith.constant 2.500000e-01 : f32
    %35 = vector.broadcast %cst_14 : f32 to vector<4x1xf32>
    %36 = arith.mulf %35, %32 : vector<4x1xf32>
    %37 = arith.mulf %34, %34 : vector<4x8xf32>
    %38 = arith.mulf %36, %36 : vector<4x1xf32>
    %cst_15 = arith.constant dense<0.000000e+00> : vector<4xf32>
    %39 = vector.multi_reduction <add>, %37, %cst_15 [1] : vector<4x8xf32> to vector<4xf32>
    %40 = vector.shape_cast %39 : vector<4xf32> to vector<4x1xf32>
    %41 = arith.addf %40, %38 : vector<4x1xf32>
    %cst_16 = arith.constant 1.000000e+00 : f32
    %42 = vector.broadcast %cst_16 : f32 to vector<4x1xf32>
    %43 = arith.mulf %42, %41 : vector<4x1xf32>
    %cst_17 = arith.constant 2.000000e+00 : f32
    %44 = vector.broadcast %cst_17 : f32 to vector<4x1xf32>
    %45 = arith.subf %44, %43 : vector<4x1xf32>
    %cst_18 = arith.constant 1.000000e+00 : f32
    %46 = vector.broadcast %cst_18 : f32 to vector<4x1xf32>
    %47 = arith.subf %46, %43 : vector<4x1xf32>
    %48 = arith.mulf %47, %47 : vector<4x1xf32>
    %cst_19 = arith.constant 1.000000e+00 : f32
    %49 = vector.broadcast %cst_19 : f32 to vector<4x1xf32>
    %50 = arith.addf %49, %48 : vector<4x1xf32>
    %51 = arith.mulf %45, %50 : vector<4x1xf32>
    %52 = arith.mulf %48, %48 : vector<4x1xf32>
    %cst_20 = arith.constant 1.000000e+00 : f32
    %53 = vector.broadcast %cst_20 : f32 to vector<4x1xf32>
    %54 = arith.addf %53, %52 : vector<4x1xf32>
    %55 = arith.mulf %51, %54 : vector<4x1xf32>
    %56 = arith.mulf %52, %52 : vector<4x1xf32>
    %cst_21 = arith.constant 1.000000e+00 : f32
    %57 = vector.broadcast %cst_21 : f32 to vector<4x1xf32>
    %58 = arith.addf %57, %56 : vector<4x1xf32>
    %59 = arith.mulf %55, %58 : vector<4x1xf32>
    %cst_22 = arith.constant 1.000000e+00 : f32
    %60 = vector.broadcast %cst_22 : f32 to vector<4x1xf32>
    %61 = arith.mulf %60, %59 : vector<4x1xf32>
    %62 = vector.broadcast %61 : vector<4x1xf32> to vector<4x8xf32>
    %63 = arith.mulf %37, %62 : vector<4x8xf32>
    %64 = arith.mulf %38, %61 : vector<4x1xf32>
    %65 = arith.mulf %63, %63 : vector<4x8xf32>
    %66 = arith.mulf %64, %64 : vector<4x1xf32>
    %cst_23 = arith.constant dense<0.000000e+00> : vector<4xf32>
    %67 = vector.multi_reduction <add>, %65, %cst_23 [1] : vector<4x8xf32> to vector<4xf32>
    %68 = vector.shape_cast %67 : vector<4xf32> to vector<4x1xf32>
    %69 = arith.addf %68, %66 : vector<4x1xf32>
    %cst_24 = arith.constant 1.000000e+00 : f32
    %70 = vector.broadcast %cst_24 : f32 to vector<4x1xf32>
    %71 = arith.mulf %70, %69 : vector<4x1xf32>
    %cst_25 = arith.constant 2.000000e+00 : f32
    %72 = vector.broadcast %cst_25 : f32 to vector<4x1xf32>
    %73 = arith.subf %72, %71 : vector<4x1xf32>
    %cst_26 = arith.constant 1.000000e+00 : f32
    %74 = vector.broadcast %cst_26 : f32 to vector<4x1xf32>
    %75 = arith.subf %74, %71 : vector<4x1xf32>
    %76 = arith.mulf %75, %75 : vector<4x1xf32>
    %cst_27 = arith.constant 1.000000e+00 : f32
    %77 = vector.broadcast %cst_27 : f32 to vector<4x1xf32>
    %78 = arith.addf %77, %76 : vector<4x1xf32>
    %79 = arith.mulf %73, %78 : vector<4x1xf32>
    %80 = arith.mulf %76, %76 : vector<4x1xf32>
    %cst_28 = arith.constant 1.000000e+00 : f32
    %81 = vector.broadcast %cst_28 : f32 to vector<4x1xf32>
    %82 = arith.addf %81, %80 : vector<4x1xf32>
    %83 = arith.mulf %79, %82 : vector<4x1xf32>
    %84 = arith.mulf %80, %80 : vector<4x1xf32>
    %cst_29 = arith.constant 1.000000e+00 : f32
    %85 = vector.broadcast %cst_29 : f32 to vector<4x1xf32>
    %86 = arith.addf %85, %84 : vector<4x1xf32>
    %87 = arith.mulf %83, %86 : vector<4x1xf32>
    %cst_30 = arith.constant 1.000000e+00 : f32
    %88 = vector.broadcast %cst_30 : f32 to vector<4x1xf32>
    %89 = arith.mulf %88, %87 : vector<4x1xf32>
    %90 = arith.mulf %66, %89 : vector<4x1xf32>
    %91 = arith.subf %7, %6 : vector<4x8xf32>
    %92 = vector.broadcast %90 : vector<4x1xf32> to vector<4x8xf32>
    %93 = arith.mulf %92, %91 : vector<4x8xf32>
    %94 = arith.addf %6, %93 : vector<4x8xf32>
    %c0_31 = arith.constant 0 : index
    %c0_32 = arith.constant 0 : index
    %95 = vector.load %arg4[%c0_31, %c0_32] : memref<4x8xf32, #tpu.memory_space<vmem>>, vector<4x8xf32>
    tpu.vector_store %arg4[%c0_31, %c0_32], %94 {strides = array<i32>} : memref<4x8xf32, #tpu.memory_space<vmem>>, vector<4x8xf32>,
    return
  }
  func.func @transform_0(%arg0: i32) -> (i32, i32) {
    %c0_i32 = arith.constant 0 : i32
    %c0_i32_0 = arith.constant 0 : i32
    return %arg0, %c0_i32 : i32, i32
  }
  func.func @transform_1(%arg0: i32) -> (i32, i32) {
    %c0_i32 = arith.constant 0 : i32
    %c0_i32_0 = arith.constant 0 : i32
    %c0_i32_1 = arith.constant 0 : i32
    return %c0_i32, %c0_i32_0 : i32, i32
  }
  func.func @transform_2(%arg0: i32) -> (i32, i32) {
    %c0_i32 = arith.constant 0 : i32
    %c0_i32_0 = arith.constant 0 : i32
    %c0_i32_1 = arith.constant 0 : i32
    return %c0_i32, %c0_i32_0 : i32, i32
  }
  func.func @transform_3(%arg0: i32) -> (i32, i32) {
    %c0_i32 = arith.constant 0 : i32
    %c0_i32_0 = arith.constant 0 : i32
    return %arg0, %c0_i32 : i32, i32
  }
}

</mosaic_0001>

<bundles_post_ra>
// kernel: tpu_custom_call.1
= control target key start
LH: loop header
LB: loop body
LE: loop exit
PB: predicated region body
PF: predicated region fallthrough
CT: control target
= control target key end

     0   :  { %s220_s0 = inlined_call_operand.vmem [shape: f32[4,32], index: 0, kind: input, shape index: {}]   ;;  %s221_s1 = inlined_call_operand.vmem [shape: f32[32,16], index: 1, kind: input, shape index: {}]   ;;  %s222_s2 = inlined_call_operand.vmem [shape: f32[1,16], index: 2, kind: input, shape index: {}]   ;;  %s223_s3 = inlined_call_operand.hbm [shape: f32[4,8], index: 3, kind: output, shape index: {}]  }
   0x1   :  { %v19_v0 = vld [vmem:[%s221_s1 + $0x18] sm:$0xff]  ;;  %v18_v1 = vld [vmem:[%s221_s1 + $0x10] sm:$0xff]  ;;  %v17_v2 = vld [vmem:[%s221_s1 + $0x8] sm:$0xff] }
   0x2   :  { %40 = vmatpush.msra.mxu0 %v19_v0 }
   0x3   :  { %8 = vsyncpa [#allocation3], 0  ;;  %v16_v3 = vld [vmem:[%s221_s1] sm:$0xff]  ;;  %vm24_vm0 = vcmask 261120   ;;  %vm49_vm1 = vcmask 60416   ;;  %s166_s1 = smov 120  }
   0x4   :  { %41 = vmatpush.msra.mxu0 %v18_v1  ;;  %v15_v4 = vld [vmem:[%s220_s0] sm:$0xf]  ;;  %s165_s0 = smov 8   ;;  %s125_s27 = sshll.u32 %s223_s3, 4  ;;  %s126_s27 = int_to_ptr.hbm [resolvable:$true] %s125_s27 }
   0x5   :  { %v138_v5 = vld [vmem:[%s222_s2] ss:$0 sm:$0xff]  ;;  %s167_s2 = smov [#allocation2]  }
   0x6   :  { %42 = vmatpush.msra.mxu0 %v17_v2  ;;  %s123_s24 = sshll.u32 %s167_s2, 4  ;;  %s124_s24 = int_to_ptr.vmem [resolvable:$true] %s123_s24 }
   0x8   :  { %43 = vmatpush.msra.mxu0 %v16_v3 }
   0x9   :  { %134 = vmatmul.msk.f32.vlgmr.msra.gmra.mxu0 %vm24_vm0, %v15_v4 }
  0x86   :  { %v45_v6 = vpop.f32.mrf.mxu0 }
  0x87   :  { %v206_v7 = vadd.f32 %v138_v5, %v45_v6 }
  0x89   :  { %v48_v8 = vmul.f32 %v206_v7, %v206_v7 }
  0x8b   :  { %v50_v9 = vsel %vm49_vm1, %v48_v8, 0.0 }
  0x8c   :  { %51 = vadd.xlane.f32.xlu0 %v50_v9 }
  0xff   :  { %v52_v10 = vpop.xlane.xlu0 %51 }
 0x100   :  { %v53_v11 = vadd.f32 0.25, %v52_v10 }
 0x102   :  { %v54_v12 = vmul.f32 0.8888889, %v53_v11 }
 0x104   :  { %v56_v13 = vsub.f32 1.0, %v54_v12  ;;  %v55_v15 = vsub.f32 2.0, %v54_v12 }
 0x106   :  { %v57_v14 = vmul.f32 %v56_v13, %v56_v13 }
 0x108   :  { %v58_v16 = vadd.f32 1.0, %v57_v14  ;;  %v60_v17 = vmul.f32 %v57_v14, %v57_v14 }
 0x10a   :  { %v59_v18 = vmul.f32 %v58_v16, %v55_v15  ;;  %v61_v19 = vadd.f32 1.0, %v60_v17  ;;  %v63_v20 = vmul.f32 %v60_v17, %v60_v17 }
 0x10c   :  { %v62_v21 = vmul.f32 %v61_v19, %v59_v18  ;;  %v64_v22 = vadd.f32 1.0, %v63_v20 }
 0x10e   :  { %v65_v23 = vmul.f32 %v64_v22, %v62_v21 }
 0x110   :  { %v66_v24 = vmul.f32 0.8888889, %v65_v23 }
 0x112   :  { %v67_v25 = vmul.f32 %v66_v24, %v48_v8  ;;  %v68_v28 = vmul.f32 0.25, %v66_v24 }
 0x114   :  { %v69_v26 = vmul.f32 %v67_v25, %v67_v25  ;;  %v70_v29 = vmul.f32 %v68_v28, %v68_v28 }
 0x116   :  { %v71_v27 = vsel %vm49_vm1, %v69_v26, 0.0 }
 0x117   :  { %72 = vadd.xlane.f32.xlu0 %v71_v27 }
 0x18a   :  { %v73_v30 = vpop.xlane.xlu0 %72 }
 0x18b   :  { %v74_v31 = vadd.f32 %v73_v30, %v70_v29 }
 0x18d   :  { %v76_v32 = vsub.f32 1.0, %v74_v31  ;;  %v75_v34 = vsub.f32 2.0, %v74_v31 }
 0x18f   :  { %v77_v33 = vmul.f32 %v76_v32, %v76_v32 }
 0x191   :  { %v78_v35 = vadd.f32 1.0, %v77_v33  ;;  %v80_v36 = vmul.f32 %v77_v33, %v77_v33 }
 0x193   :  { %v79_v37 = vmul.f32 %v78_v35, %v75_v34  ;;  %v81_v38 = vadd.f32 1.0, %v80_v36  ;;  %v83_v39 = vmul.f32 %v80_v36, %v80_v36 }
 0x195   :  { %v82_v40 = vmul.f32 %v81_v38, %v79_v37  ;;  %v84_v41 = vadd.f32 1.0, %v83_v39 }
 0x197   :  { %v85_v42 = vmul.f32 %v84_v41, %v82_v40 }
 0x199   :  { %v86_v43 = vmul.f32 %v85_v42, %v69_v26  ;;  %v87_v44 = vmul.f32 %v85_v42, %v70_v29 }
 0x19b   :  { %v88_v45 = vmul.f32 %v86_v43, %v86_v43  ;;  %v89_v47 = vmul.f32 %v87_v44, %v87_v44 }
 0x19d   :  { %v90_v46 = vsel %vm49_vm1, %v88_v45, 0.0 }
 0x19e   :  { %91 = vadd.xlane.f32.xlu1 %v90_v46 }
 0x1b7   :  { %107 = vrot.lane.b32.xlu1 %v206_v7, %s165_s0 }
 0x211   :  { %v92_v48 = vpop.xlane.xlu1 %91 }
 0x212   :  { %v93_v49 = vadd.f32 %v92_v48, %v89_v47 }
 0x214   :  { %v95_v50 = vsub.f32 1.0, %v93_v49  ;;  %v94_v54 = vsub.f32 2.0, %v93_v49 }
 0x216   :  { %v96_v51 = vmul.f32 %v95_v50, %v95_v50 }
 0x218   :  { %v97_v52 = vadd.f32 1.0, %v96_v51  ;;  %v99_v53 = vmul.f32 %v96_v51, %v96_v51 }
 0x21a   :  { %v98_v55 = vmul.f32 %v97_v52, %v94_v54  ;;  %v100_v56 = vadd.f32 1.0, %v99_v53  ;;  %v102_v57 = vmul.f32 %v99_v53, %v99_v53 }
 0x21c   :  { %v101_v58 = vmul.f32 %v100_v56, %v98_v55  ;;  %v103_v59 = vadd.f32 1.0, %v102_v57 }
 0x21e   :  { %v104_v60 = vmul.f32 %v103_v59, %v101_v58 }
 0x220   :  { %v105_v63 = vmul.f32 %v104_v60, %v89_v47 }
 0x229   :  { %v108_v61 = vpop.permute.xlu1 %107 }
 0x22a   :  { %v110_v62 = vsub.f32 %v206_v7, %v108_v61 }
 0x22c   :  { %v111_v0 = vmul.f32 %v110_v62, %v105_v63 }
 0x22e   :  { %113 = vrot.lane.b32.xlu2 %v111_v0, %s166_s1 }
 0x288   :  { %v114_v1 = vpop.permute.xlu2 %113 }
 0x289   :  { %v116_v2 = vadd.f32 %v114_v1, %v206_v7 }
 0x28b   :  { %117 = vst.msk [vmem:[#allocation2] sm:$0xf] %vm49_vm1, %v116_v2 }
 0x28c   :  { %128 = dma.vmem_to_hbm [thread:$0]  %s124_s24, 64, %s126_s27, [#allocation3]  }
 0x28d   :  { %163 = dma.done.wait [#allocation3], 64  }
 0x28e   :  { %164 = vsyncadd [#allocation3], 4294967232 }
 0x28f   :  { %133 = vsyncpa [#allocation3], 1 }

</bundles_post_ra>
